<compile_context>
chip_gen: v6e
topology: v6e:2x2x1
jax: 0.10.0
libtpu: 0.0.40
codegen_flags: <defaults>
</compile_context>

<pallas_src>
import functools

import jax
import jax.numpy as jnp
from jax.experimental import pallas as pl
from jax.experimental.pallas import tpu as pltpu


def ensemble_kernel(w_norm_ref, x_ref, w_all_ref, b_eff_ref, o_ref, *,
                    num_models, d_out):
    """One grid step = one (batch tile, F tile).

    w_norm_ref : SMEM (M,)        normalized ensemble weights (scalar prefetch)
    x_ref      : VMEM (tb, tk)    batch tile of inputs
    w_all_ref  : VMEM (tk, M*D)   all models' weights, model axis folded into N
    b_eff_ref  : VMEM (1, D)      precomputed weighted bias sum_m w_m * b[m]
    o_ref      : VMEM (tb, D)     f32 output block, doubles as the accumulator
    """
    k = pl.program_id(1)

    @pl.when(k == 0)
    def _init():
        # Weighted bias added exactly once, at accumulator init.
        o_ref[...] = jnp.broadcast_to(b_eff_ref[...], o_ref.shape)

    # Single lane-dense MXU pass over all models: (tb, tk) @ (tk, M*D).
    logits_all = jnp.dot(x_ref[...], w_all_ref[...],
                         preferred_element_type=jnp.float32)

    # Weighted sum over the M chunks of D, accumulated directly into o_ref
    # (output dtype is f32, so no precision is lost and no scratch is needed).
    acc = o_ref[...]
    for m in range(num_models):  # static unroll; M is small
        acc = acc + w_norm_ref[m] * logits_all[:, m * d_out:(m + 1) * d_out]
    o_ref[...] = acc


def ensemble_forward(x, stacked_w, stacked_b, ens_weights, *,
                     block_b=256, block_f=512, use_bf16_matmul=False):
    """Pallas implementation of EnsembleModel.forward for linear sub-models.

    x:           (B, F)    float32
    stacked_w:   (M, F, D) float32  per-model linear weights
    stacked_b:   (M, D)    float32  per-model biases
    ens_weights: (M,)      float32  raw ensemble weights (normalized here, as in __init__)
    Returns (None, weighted_avg), matching the PyTorch module's dim == 2 branch.
    """
    B, F = x.shape
    M, F2, D = stacked_w.shape
    assert F2 == F

    # Buffer normalization done in the PyTorch __init__.
    w_norm = (ens_weights / jnp.sum(ens_weights, axis=0)).astype(jnp.float32)

    # Fold model axis into the matmul N dimension: W_all[f, m*D + d] = W[m, f, d].
    w_all = jnp.transpose(stacked_w, (1, 0, 2)).reshape(F, M * D)

    # Weighted bias, added once inside the kernel (hoists M-1 broadcasts + adds).
    b_eff = jnp.sum(w_norm[:, None] * stacked_b, axis=0).reshape(1, D).astype(jnp.float32)

    if use_bf16_matmul:
        # bf16 MXU inputs, f32 accumulation/epilogue (v5e/v6e/v7x bf16 MXU path).
        x_mm = x.astype(jnp.bfloat16)
        w_all = w_all.astype(jnp.bfloat16)
    else:
        x_mm = x.astype(jnp.float32)
        w_all = w_all.astype(jnp.float32)

    # Tile sizes: use the requested tile if it divides the dim, else the full dim
    # (keeps tiny test shapes as a single block; production shapes get tiled).
    tb = block_b if (B > block_b and B % block_b == 0) else B
    tk = block_f if (F > block_f and F % block_f == 0) else F
    nb, nk = B // tb, F // tk
    n_cols = M * D

    kernel = functools.partial(ensemble_kernel, num_models=M, d_out=D)

    weighted_avg = pl.pallas_call(
        kernel,
        out_shape=jax.ShapeDtypeStruct((B, D), jnp.float32),
        grid_spec=pltpu.PrefetchScalarGridSpec(
            num_scalar_prefetch=1,              # normalized ensemble weights -> SMEM
            grid=(nb, nk),                      # (batch tiles, F reduction tiles)
            in_specs=[
                pl.BlockSpec((tb, tk), lambda i, k, w: (i, k)),       # x tile
                pl.BlockSpec((tk, n_cols), lambda i, k, w: (k, 0)),   # W_all tile
                pl.BlockSpec((1, D), lambda i, k, w: (0, 0)),         # b_eff (resident)
            ],
            out_specs=pl.BlockSpec((tb, D), lambda i, k, w: (i, 0)),  # accumulator output
        ),
        compiler_params=pltpu.CompilerParams(
            # Batch axis parallel (shards across v7x's two TensorCores; no-op on
            # single-TC v5e/v6e); F is the reduction axis, kept last.
            dimension_semantics=("parallel", "arbitrary"),
            # Explicit scoped-VMEM limit: above v5e's 16 MiB default, well under
            # v7x's 64 MiB physical VMEM.
            vmem_limit_bytes=32 * 1024 * 1024,
        ),
    )(w_norm, x_mm, w_all, b_eff)

    # dim == 2 -> (None, weighted_avg); the dim == 4 branch would just pad more Nones.
    return (None, weighted_avg)


if __name__ == "__main__":
    key = jax.random.PRNGKey(0)
    k_x, k_w, k_b, k_e = jax.random.split(key, 4)

    M, B, F, D = 3, 8, 32, 16  # 3 sub-models, small demo shapes

    x = jax.random.normal(k_x, (B, F), dtype=jnp.float32)
    stacked_w = jax.random.normal(k_w, (M, F, D), dtype=jnp.float32) * 0.1
    stacked_b = jax.random.normal(k_b, (M, D), dtype=jnp.float32) * 0.1
    ens_weights = jax.random.uniform(k_e, (M,), dtype=jnp.float32) + 0.5

    # Pure-JAX f32 reference of the same forward.
    w_norm = ens_weights / jnp.sum(ens_weights, axis=0)
    logits = jnp.einsum("bf,mfd->mbd", x, stacked_w) + stacked_b[:, None, :]
    ref = jnp.sum(logits * w_norm[:, None, None], axis=0)

    # f32 matmul path.
    none_out, out = ensemble_forward(x, stacked_w, stacked_b, ens_weights)
    out = jax.block_until_ready(out)
    assert none_out is None
    assert out.shape == (B, D)
    assert jnp.allclose(out, ref, atol=1e-4, rtol=1e-4)

    # bf16-MXU path (f32 accumulation) — looser tolerance vs the f32 reference.
    _, out_bf16 = ensemble_forward(x, stacked_w, stacked_b, ens_weights,
                                   use_bf16_matmul=True)
    out_bf16 = jax.block_until_ready(out_bf16)
    assert jnp.allclose(out_bf16, ref, atol=3e-2, rtol=3e-2)

    print("KERNEL_OK")
</pallas_src>

<mosaic_0001>
module attributes {stable_mosaic.version = 11 : i64} {
  func.func @ensemble_kernel(%arg0: i32, %arg1: i32, %arg2: memref<3xf32, #tpu.memory_space<smem>>, %arg3: memref<8x32xf32, #tpu.memory_space<vmem>>, %arg4: memref<32x48xf32, #tpu.memory_space<vmem>>, %arg5: memref<1x16xf32, #tpu.memory_space<vmem>>, %arg6: memref<8x16xf32, #tpu.memory_space<vmem>>) attributes {dimension_semantics = [#tpu.dimension_semantics<parallel>, #tpu.dimension_semantics<arbitrary>], iteration_bounds = array<i64: 1, 1>, scalar_prefetch = 1 : i64, scratch_operands = 0 : i64, tpu.core_type = #tpu.core_type<tc>, window_params = [{transform_indices = @transform_0, window_bounds = array<i64: 8, 32>}, {transform_indices = @transform_1, window_bounds = array<i64: 32, 48>}, {pipeline_mode = #tpu.pipeline_mode<synchronous>, transform_indices = @transform_2, window_bounds = array<i64: 1, 16>}, {transform_indices = @transform_3, window_bounds = array<i64: 8, 16>}]} {
    %c0_i32 = arith.constant 0 : i32
    %0 = arith.cmpi eq, %arg1, %c0_i32 : i32
    %1 = arith.extui %0 : i1 to i32
    %c0_i32_0 = arith.constant 0 : i32
    %2 = arith.cmpi ne, %1, %c0_i32_0 : i32
    scf.if %2 {
      %c0_9 = arith.constant 0 : index
      %c0_10 = arith.constant 0 : index
      %23 = vector.load %arg5[%c0_9, %c0_10] : memref<1x16xf32, #tpu.memory_space<vmem>>, vector<1x16xf32>
      %24 = vector.shape_cast %23 : vector<1x16xf32> to vector<1x16xf32>
      %25 = vector.broadcast %24 : vector<1x16xf32> to vector<8x16xf32>
      %c0_11 = arith.constant 0 : index
      %c0_12 = arith.constant 0 : index
      %26 = vector.load %arg6[%c0_11, %c0_12] : memref<8x16xf32, #tpu.memory_space<vmem>>, vector<8x16xf32>
      tpu.vector_store %arg6[%c0_11, %c0_12], %25 {strides = array<i32>} : memref<8x16xf32, #tpu.memory_space<vmem>>, vector<8x16xf32>,
    } else {
    }
    %c0 = arith.constant 0 : index
    %c0_1 = arith.constant 0 : index
    %3 = vector.load %arg3[%c0, %c0_1] : memref<8x32xf32, #tpu.memory_space<vmem>>, vector<8x32xf32>
    %c0_2 = arith.constant 0 : index
    %c0_3 = arith.constant 0 : index
    %4 = vector.load %arg4[%c0_2, %c0_3] : memref<32x48xf32, #tpu.memory_space<vmem>>, vector<32x48xf32>
    %cst = arith.constant dense<0.000000e+00> : vector<8x48xf32>
    %5 = tpu.matmul %3, %4, %cst {dimension_numbers = #tpu.dot_dimension_numbers<[1], [0], [0], [1], [0, 0, 1, 1], [], []>} : vector<8x32xf32>, vector<32x48xf32>, vector<8x48xf32> -> vector<8x48xf32>
    %c0_4 = arith.constant 0 : index
    %c0_5 = arith.constant 0 : index
    %6 = vector.load %arg6[%c0_4, %c0_5] : memref<8x16xf32, #tpu.memory_space<vmem>>, vector<8x16xf32>
    %c0_6 = arith.constant 0 : index
    %7 = memref.load %arg2[%c0_6] : memref<3xf32, #tpu.memory_space<smem>>
    %8 = vector.extract_strided_slice %5 {offsets = [0, 0], sizes = [8, 16], strides = [1, 1]} : vector<8x48xf32> to vector<8x16xf32>
    %9 = vector.broadcast %7 : f32 to vector<8x16xf32>
    %10 = arith.mulf %9, %8 : vector<8x16xf32>
    %11 = arith.addf %6, %10 : vector<8x16xf32>
    %c1 = arith.constant 1 : index
    %12 = memref.load %arg2[%c1] : memref<3xf32, #tpu.memory_space<smem>>
    %13 = vector.extract_strided_slice %5 {offsets = [0, 16], sizes = [8, 16], strides = [1, 1]} : vector<8x48xf32> to vector<8x16xf32>
    %14 = vector.broadcast %12 : f32 to vector<8x16xf32>
    %15 = arith.mulf %14, %13 : vector<8x16xf32>
    %16 = arith.addf %11, %15 : vector<8x16xf32>
    %c2 = arith.constant 2 : index
    %17 = memref.load %arg2[%c2] : memref<3xf32, #tpu.memory_space<smem>>
    %18 = vector.extract_strided_slice %5 {offsets = [0, 32], sizes = [8, 16], strides = [1, 1]} : vector<8x48xf32> to vector<8x16xf32>
    %19 = vector.broadcast %17 : f32 to vector<8x16xf32>
    %20 = arith.mulf %19, %18 : vector<8x16xf32>
    %21 = arith.addf %16, %20 : vector<8x16xf32>
    %c0_7 = arith.constant 0 : index
    %c0_8 = arith.constant 0 : index
    %22 = vector.load %arg6[%c0_7, %c0_8] : memref<8x16xf32, #tpu.memory_space<vmem>>, vector<8x16xf32>
    tpu.vector_store %arg6[%c0_7, %c0_8], %21 {strides = array<i32>} : memref<8x16xf32, #tpu.memory_space<vmem>>, vector<8x16xf32>,
    return
  }
  func.func @transform_0(%arg0: i32, %arg1: i32, %arg2: memref<3xf32, #tpu.memory_space<smem>>) -> (i32, i32) {
    %c0_i32 = arith.constant 0 : i32
    return %arg0, %arg1 : i32, i32
  }
  func.func @transform_1(%arg0: i32, %arg1: i32, %arg2: memref<3xf32, #tpu.memory_space<smem>>) -> (i32, i32) {
    %c0_i32 = arith.constant 0 : i32
    %c0_i32_0 = arith.constant 0 : i32
    return %arg1, %c0_i32 : i32, i32
  }
  func.func @transform_2(%arg0: i32, %arg1: i32, %arg2: memref<3xf32, #tpu.memory_space<smem>>) -> (i32, i32) {
    %c0_i32 = arith.constant 0 : i32
    %c0_i32_0 = arith.constant 0 : i32
    %c0_i32_1 = arith.constant 0 : i32
    return %c0_i32, %c0_i32_0 : i32, i32
  }
  func.func @transform_3(%arg0: i32, %arg1: i32, %arg2: memref<3xf32, #tpu.memory_space<smem>>) -> (i32, i32) {
    %c0_i32 = arith.constant 0 : i32
    %c0_i32_0 = arith.constant 0 : i32
    return %arg0, %c0_i32 : i32, i32
  }
}

</mosaic_0001>

<bundles_post_ra>
// kernel: tpu_custom_call.1
= control target key start
LH: loop header
LB: loop body
LE: loop exit
PB: predicated region body
PF: predicated region fallthrough
CT: control target
= control target key end

     0   :  { %s283_s15 = smov [#allocation3]   ;;  %s335_s0 = inlined_call_operand.hbm [shape: f32[3], index: 0, kind: input, shape index: {}]   ;;  %s336_s1 = inlined_call_operand.hbm [shape: f32[8,32], index: 1, kind: input, shape index: {}]   ;;  %s337_s2 = inlined_call_operand.hbm [shape: f32[32,48], index: 2, kind: input, shape index: {}]   ;;  %s338_s3 = inlined_call_operand.vmem [shape: f32[1,16], index: 3, kind: input, shape index: {}]   ;;  %s339_s4 = inlined_call_operand.hbm [shape: f32[8,16], index: 4, kind: output, shape index: {}]  }
   0x1   :  { %10 = dma.hbm_to_smem %s335_s0, 16, %s283_s15, [#allocation2] }
   0x2   :  { %275 = dma.done.wait [#allocation2], 16 }
   0x3   :  { %276 = vsyncadd [#allocation2], 4294967280 }
   0x4   :  { %12 = sfence }
   0x5   :  { %13 = vsyncpa [#allocation5], 0 }
   0x6   :  { %14 = vsyncpa [#allocation8], 0 }
   0x7   :  { %15 = vsyncpa [#allocation6], 0  ;;  %s284_s18 = smov [#allocation4]   ;;  %s285_s20 = smov [#allocation7]  }
   0x8   :  { %s22_s19 = sshll.u32 %s284_s18, 4  ;;  %s31_s21 = sshll.u32 %s285_s20, 4  ;;  %s23_s19 = int_to_ptr.vmem [resolvable:$true] %s22_s19  ;;  %s32_s21 = int_to_ptr.vmem [resolvable:$true] %s31_s21 }
   0x9   :  { %s223_s22 = scalar_lea.vmem %s23_s19, 128  ;;  %p228_p1 = scmp.lt.s32.totalorder %s23_s19, %s23_s19 }
   0xa   :  { %p224_p0 = scmp.ne.s32.totalorder %s23_s19, %s223_s22  ;;  %p229_p2 = scmp.lt.s32.totalorder %s223_s22, %s223_s22 }
   0xc   :  { %p230_p3 = por %p229_p2, %p228_p1 }
   0xe   :  { %p231_p4 = pnand %p230_p3, %p224_p0 }
  0x10   :  { %234 = shalt.err (!%p231_p4)
}
  0x11   :  { %25 = dma.hbm_to_vmem [thread:$0]  %s336_s1, 128, %s23_s19, [#allocation5]  }
  0x12   :  { %s243_s24 = scalar_lea.vmem %s32_s21, 512  ;;  %p248_p6 = scmp.lt.s32.totalorder %s32_s21, %s32_s21 }
  0x13   :  { %p244_p5 = scmp.ne.s32.totalorder %s32_s21, %s243_s24  ;;  %p249_p7 = scmp.lt.s32.totalorder %s243_s24, %s243_s24 }
  0x15   :  { %p250_p8 = por %p249_p7, %p248_p6 }
  0x17   :  { %p251_p9 = pnand %p250_p8, %p244_p5 }
  0x19   :  { %254 = shalt.err (!%p251_p9)
}
  0x1a   :  { %s286_s25 = smov 128   ;;  %s287_s26 = smov 8  }
  0x1b   :  { %37 = dma.hbm_to_vmem [thread:$0]  %s337_s2, 512, %s32_s21, [#allocation8], %s286_s25, %s286_s25, %s287_s26  }
  0x1c   :  { %277 = dma.done.wait [#allocation5], 128  }
  0x1d   :  { %278 = vsyncadd [#allocation5], 4294967168 }
  0x1e   :  { %279 = dma.done.wait [#allocation8], 512  }
  0x1f   :  { %280 = vsyncadd [#allocation8], 4294966784  ;;  %v288_v0 = vmov 0.0   ;;  %vm289_vm0 = vmmov 0   ;;  %v63_v1 = vld [vmem:[#allocation7 + $0x18] sm:$0xff]  ;;  %v62_v2 = vld [vmem:[#allocation7 + $0x10] sm:$0xff] }
  0x20   :  { %186 = vmatprep.subr.mxu0 %v288_v0  ;;  %194 = vmatprep.mubr.msk.f32.mxu0 %vm289_vm0, %v288_v0  ;;  %v61_v3 = vld [vmem:[#allocation7 + $0x8] sm:$0xff]  ;;  %v60_v4 = vld [vmem:[#allocation7] sm:$0xff]  ;;  %v59_v5 = vld [vmem:[#allocation4] sm:$0xff]  ;;  %vm64_vm1 = vcmask 261120   ;;  %vm57_vm2 = vcmask 130048   ;;  %s179_s29 = sld [smem:[#allocation3 + $0x1]] }
  0x21   :  { %187 = vmatpush3.msra.mxu0 %v63_v1  ;;  %v177_v6 = vld [vmem:[%s338_s3] ss:$0 sm:$0xff]  ;;  %s180_s30 = sld [smem:[#allocation3 + $0x2]]  ;;  %s290_s5 = smov 112  }
  0x22   :  { %188 = vmatprep.subr.mxu0 %v288_v0  ;;  %58 = vst.msk [vmem:[#allocation9] sm:$0xff] %vm57_vm2, %v177_v6  ;;  %s291_s6 = smov 96   ;;  %s139_s7 = sld [smem:[#allocation3]] }
  0x23   :  { %189 = vmatpush3.msra.mxu0 %v62_v2  ;;  %s292_s3 = smov [#allocation9]  }
  0x24   :  { %190 = vmatprep.subr.mxu0 %v288_v0  ;;  %s167_s8 = sshll.u32 %s292_s3, 4  ;;  %s168_s8 = int_to_ptr.vmem [resolvable:$true] %s167_s8 }
  0x25   :  { %191 = vmatpush3.msra.mxu0 %v61_v3  ;;  %s255_s9 = scalar_lea.vmem %s168_s8, 128  ;;  %p260_p11 = scmp.lt.s32.totalorder %s168_s8, %s168_s8 }
  0x26   :  { %192 = vmatprep.subr.mxu0 %v288_v0  ;;  %v144_v7 = vstv %s179_s29  ;;  %p256_p10 = scmp.ne.s32.totalorder %s168_s8, %s255_s9  ;;  %p261_p12 = scmp.lt.s32.totalorder %s255_s9, %s255_s9 }
  0x27   :  { %193 = vmatpush3.msra.mxu0 %v60_v4  ;;  %v152_v10 = vstv %s180_s30 }
  0x28   :  { %195 = vmatmul.mubr.msk.f32.vlgmr.msra.gmra.mxu0 %vm64_vm1, %v59_v5  ;;  %v140_v13 = vstv %s139_s7  ;;  %p262_p13 = por %p261_p12, %p260_p11 }
  0x29   :  { %v138_v15 = vld [vmem:[#allocation9] sm:$0xff] }
  0x2a   :  { %p263_p0 = pnand %p262_p13, %p256_p10 }
  0xe8   :  { %v134_v8 = vpop.f32.mrf.mxu0 }
  0xe9   :  { %v145_v9 = vmul.f32 %v144_v7, %v134_v8  ;;  %v153_v12 = vmul.f32 %v152_v10, %v134_v8  ;;  %v141_v14 = vmul.f32 %v140_v13, %v134_v8 }
  0xea   :  { %v196_v11 = vpop.f32.mrf.mxu0 }
  0xeb   :  { %147 = vrot.lane.b32.xlu0 %v145_v9, %s290_s5  ;;  %v142_v17 = vadd.f32 %v141_v14, %v138_v15 }
  0xef   :  { %155 = vrot.lane.b32.xlu0 %v153_v12, %s291_s6 }
 0x15d   :  { %v148_v16 = vpop.permute.xlu0 %147 }
 0x15e   :  { %v150_v18 = vadd.f32 %v148_v16, %v142_v17 }
 0x161   :  { %v156_v19 = vpop.permute.xlu0 %155 }
 0x162   :  { %v158_v20 = vadd.f32 %v156_v19, %v150_v18 }
 0x164   :  { %160 = vst.msk [vmem:[#allocation9] sm:$0xff] %vm57_vm2, %v158_v20 }
 0x165   :  { %266 = shalt.err (!%p263_p0)
}
 0x166   :  { %170 = dma.vmem_to_hbm [thread:$0]  %s168_s8, 128, %s339_s4, [#allocation6]  }
 0x167   :  { %281 = dma.done.wait [#allocation6], 128  }
 0x168   :  { %282 = vsyncadd [#allocation6], 4294967168 }
 0x169   :  { %174 = vsyncpa [#allocation5], 1 }
 0x16a   :  { %175 = vsyncpa [#allocation8], 1 }
 0x16b   :  { %176 = vsyncpa [#allocation6], 1 }

</bundles_post_ra>
